<compile_context>
chip_gen: v5e
topology: v5e:2x2
jax: 0.10.0
libtpu: 0.0.40
codegen_flags: <defaults>
</compile_context>

<pallas_src>
from functools import partial

import jax
import jax.numpy as jnp
from jax.experimental import pallas as pl
from jax.experimental.pallas import tpu as pltpu


def _shift_left(v, off):
    """Circular left-shift along lanes: out[:, j] = v[:, (j + off) % L].

    Built from two static lane slices + concat (lowers to XLU rotate/select,
    same cost class as pltpu.roll) so it is semantically unambiguous.
    """
    if off == 0:
        return v
    return jnp.concatenate([v[:, off:], v[:, :off]], axis=1)


def _fused_conv_kernel(x_ref, w_ref, b_ref, o_ref, slab_ref, *,
                       tap_offsets, group, n_real_taps):
    # x_ref   : (Nb, Cin, L)        channel-flattened images, L = Hp*Wp
    # w_ref   : (Cout, K_pad)       K_pad = n_tap_pad*Cin, ordered (tap, ci);
    #                               dummy-tap columns are zero
    # b_ref   : (Cout, 1)           f32 bias
    # o_ref   : (Nb, Cout, L)       lane-dense flattened output
    # slab_ref: (K_pad, Nb*L)       VMEM im2col slab (compute dtype, e.g. bf16)
    nb, cin, L = x_ref.shape
    k_pad = slab_ref.shape[0]
    n_tap_pad = k_pad // cin
    cdtype = slab_ref.dtype

    # ---- build the im2col slab: grouped, sublane-tile-aligned stores ----
    for i in range(nb):                                   # static loop (small Nb)
        xi = x_ref[i].astype(cdtype)                      # (Cin, L), cast once
        shifted = {}                                      # reuse per tap offset
        col0 = i * L
        for g in range(n_tap_pad // group):
            rows = []
            for t in range(g * group, (g + 1) * group):
                off = tap_offsets[min(t, n_real_taps - 1)]   # dummy taps reuse last
                if off not in shifted:
                    shifted[off] = _shift_left(xi, off)      # XLU lane rotate
                rows.append(shifted[off])
            blk = rows[0] if group == 1 else jnp.concatenate(rows, axis=0)
            r0 = g * group * cin
            slab_ref[r0:r0 + group * cin, col0:col0 + L] = blk

    # ---- one fused MXU contraction over all Nb images, f32 accumulation ----
    acc = jnp.dot(w_ref[...], slab_ref[...],
                  preferred_element_type=jnp.float32)     # (Cout, Nb*L) f32
    acc = acc + b_ref[...]                                # f32 bias, lane-broadcast

    for i in range(nb):                                   # aligned (Cout, L) stores
        o_ref[i] = acc[:, i * L:(i + 1) * L].astype(o_ref.dtype)


def _largest_divisor_leq(n, cap):
    cap = max(1, min(n, cap))
    for d in range(cap, 0, -1):
        if n % d == 0:
            return d
    return 1


def ignore_conv2d_forward(t, x_nchw, weight_oihw, bias, *, stride=1, padding=0,
                          dilation=1, compute_dtype=jnp.bfloat16,
                          max_images_per_step=8, slab_vmem_budget=4 << 20):
    """Matches IgnoreConv2d.forward(t, x): `t` is ignored."""
    del t  # IgnoreConv2d ignores its first argument.
    if stride != 1:
        raise NotImplementedError("shifted-view im2col requires stride == 1")

    N, Cin, H, W = x_nchw.shape
    Cout, Cin_w, KH, KW = weight_oihw.shape
    assert Cin == Cin_w, "groups=1 only"
    if bias is None:
        bias = jnp.zeros((Cout,), dtype=x_nchw.dtype)

    Hp, Wp = H + 2 * padding, W + 2 * padding
    Ho = Hp - dilation * (KH - 1)
    Wo = Wp - dilation * (KW - 1)
    assert Ho > 0 and Wo > 0, "kernel larger than (padded) input"

    # ---- input glue: zero HBM copies when padding == 0 (reshape is a bitcast) ----
    x = x_nchw
    if padding:
        x = jnp.pad(x, ((0, 0), (0, 0), (padding, padding), (padding, padding)))
    L = Hp * Wp                       # per-image lane width (256 for 16x16)
    x_flat = x.reshape(N, Cin, L)

    n_taps = KH * KW
    tap_offsets = tuple(kh * dilation * Wp + kw * dilation
                        for kh in range(KH) for kw in range(KW))

    # ---- sublane-tile-aligned tap grouping (8 f32 rows / 16 bf16 rows per store) ----
    cdtype = jnp.dtype(compute_dtype)
    rows_per_tile = 8 * max(1, 4 // cdtype.itemsize)      # f32: 8, bf16: 16
    if Cin < rows_per_tile and rows_per_tile % Cin == 0:
        group = rows_per_tile // Cin
    else:
        group = 1
    n_tap_pad = ((n_taps + group - 1) // group) * group   # pad with dummy taps
    K = n_taps * Cin
    K_pad = n_tap_pad * Cin

    # weight (O,I,KH,KW) -> (Cout, K) with k ordered (kh, kw, ci) to match slab,
    # then zero-pad the dummy-tap columns and cast to the compute dtype.
    w2 = jnp.transpose(weight_oihw, (0, 2, 3, 1)).reshape(Cout, K)
    if K_pad != K:
        w2 = jnp.pad(w2, ((0, 0), (0, K_pad - K)))
    w2 = w2.astype(cdtype)
    b2 = bias.reshape(Cout, 1).astype(jnp.float32)

    # ---- images per grid step: divide N, fit VMEM budget, keep >= 2 steps (v7x) ----
    max_nb = max(1, min(max_images_per_step,
                        slab_vmem_budget // max(1, K_pad * L * cdtype.itemsize)))
    nb = _largest_divisor_leq(N, min(max_nb, N // 2)) if N >= 2 else 1
    steps = N // nb

    # ---- explicit scoped-VMEM limit (v5e default is only 16 MiB) ----
    x_itemsize = jnp.dtype(x_nchw.dtype).itemsize
    vmem_est = (2 * nb * (Cin + Cout) * L * x_itemsize        # double-buffered in/out
                + K_pad * nb * L * cdtype.itemsize            # slab scratch
                + Cout * K_pad * cdtype.itemsize + Cout * 4 + 4096)
    vmem_limit = int(min(100 << 20, max(8 << 20, 2 * vmem_est)))

    out_flat = pl.pallas_call(
        partial(_fused_conv_kernel, tap_offsets=tap_offsets, group=group,
                n_real_taps=n_taps),
        out_shape=jax.ShapeDtypeStruct((N, Cout, L), x_nchw.dtype),
        grid_spec=pltpu.PrefetchScalarGridSpec(
            num_scalar_prefetch=0,
            grid=(steps,),
            in_specs=[
                pl.BlockSpec((nb, Cin, L), lambda n: (n, 0, 0)),
                pl.BlockSpec((Cout, K_pad), lambda n: (0, 0)),
                pl.BlockSpec((Cout, 1), lambda n: (0, 0)),
            ],
            out_specs=pl.BlockSpec((nb, Cout, L), lambda n: (n, 0, 0)),
            scratch_shapes=[pltpu.VMEM((K_pad, nb * L), cdtype)],
        ),
        compiler_params=pltpu.CompilerParams(
            dimension_semantics=("parallel",),
            vmem_limit_bytes=vmem_limit),
    )(x_flat, w2, b2)

    # (N, Cout, Hp*Wp) -> (N, Cout, Hp, Wp); keep the Ho valid window rows and
    # drop the (KW-1)*dilation wrap-around columns per row.
    return out_flat.reshape(N, Cout, Hp, Wp)[:, :, :Ho, :Wo]


if __name__ == "__main__":
    # IgnoreConv2d(dim_in=4, dim_out=8)  defaults: ksize=3, stride=1, padding=0,
    # dilation=1, groups=1, bias=True, transpose=False
    dim_in, dim_out, ksize = 4, 8, 3
    N, H, W = 2, 16, 16

    key = jax.random.PRNGKey(0)
    kx, kw, kb, kt = jax.random.split(key, 4)

    x = jax.random.normal(kx, (N, dim_in, H, W), dtype=jnp.float32)
    t = jax.random.normal(kt, (N, 1), dtype=jnp.float32)  # ignored by forward
    weight = 0.1 * jax.random.normal(kw, (dim_out, dim_in, ksize, ksize),
                                     dtype=jnp.float32)
    bias = 0.1 * jax.random.normal(kb, (dim_out,), dtype=jnp.float32)

    out = ignore_conv2d_forward(t, x, weight, bias)   # bf16 operands, f32 accumulate
    out = jax.block_until_ready(out)
    assert out.shape == (N, dim_out, H - ksize + 1, W - ksize + 1)

    # Tight check against a reference using the same bf16 operand quantization
    # (differences are only f32 accumulation order).
    ref_bf16 = jax.lax.conv_general_dilated(
        x.astype(jnp.bfloat16), weight.astype(jnp.bfloat16), (1, 1), "VALID",
        dimension_numbers=("NCHW", "OIHW", "NCHW"),
        preferred_element_type=jnp.float32,
    ) + bias[None, :, None, None]
    assert jnp.allclose(out, ref_bf16, atol=1e-3, rtol=1e-3)

    # Sanity check against the full-f32 reference (bf16 quantization error budget).
    ref_f32 = jax.lax.conv_general_dilated(
        x, weight, (1, 1), "VALID",
        dimension_numbers=("NCHW", "OIHW", "NCHW"),
    ) + bias[None, :, None, None]
    assert jnp.allclose(out, ref_f32, atol=3e-2, rtol=3e-2)

    print("KERNEL_OK")
</pallas_src>

<mosaic_0001>
module attributes {stable_mosaic.version = 11 : i64} {
  func.func @_fused_conv_kernel(%arg0: i32, %arg1: memref<1x4x256xf32, #tpu.memory_space<vmem>>, %arg2: memref<8x48xbf16, #tpu.memory_space<vmem>>, %arg3: memref<8x1xf32, #tpu.memory_space<vmem>>, %arg4: memref<1x8x256xf32, #tpu.memory_space<vmem>>, %arg5: memref<48x256xbf16, #tpu.memory_space<vmem>>) attributes {dimension_semantics = [#tpu.dimension_semantics<parallel>], iteration_bounds = array<i64: 2>, scalar_prefetch = 0 : i64, scratch_operands = 1 : i64, tpu.core_type = #tpu.core_type<tc>, window_params = [{transform_indices = @transform_0, window_bounds = array<i64: 1, 4, 256>}, {pipeline_mode = #tpu.pipeline_mode<synchronous>, transform_indices = @transform_1, window_bounds = array<i64: 8, 48>}, {pipeline_mode = #tpu.pipeline_mode<synchronous>, transform_indices = @transform_2, window_bounds = array<i64: 8, 1>}, {transform_indices = @transform_3, window_bounds = array<i64: 1, 8, 256>}]} {
    %c0 = arith.constant 0 : index
    %c0_0 = arith.constant 0 : index
    %c0_1 = arith.constant 0 : index
    %0 = vector.load %arg1[%c0, %c0_0, %c0_1] : memref<1x4x256xf32, #tpu.memory_space<vmem>>, vector<1x4x256xf32>
    %1 = vector.shape_cast %0 : vector<1x4x256xf32> to vector<4x256xf32>
    %2 = arith.truncf %1 : vector<4x256xf32> to vector<4x256xbf16>
    %3 = vector.extract_strided_slice %2 {offsets = [0, 1], sizes = [4, 255], strides = [1, 1]} : vector<4x256xbf16> to vector<4x255xbf16>
    %4 = vector.extract_strided_slice %2 {offsets = [0, 0], sizes = [4, 1], strides = [1, 1]} : vector<4x256xbf16> to vector<4x1xbf16>
    %5 = tpu.concatenate %3, %4 in 1 : vector<4x255xbf16>, vector<4x1xbf16> -> vector<4x256xbf16>
    %6 = vector.extract_strided_slice %2 {offsets = [0, 2], sizes = [4, 254], strides = [1, 1]} : vector<4x256xbf16> to vector<4x254xbf16>
    %7 = vector.extract_strided_slice %2 {offsets = [0, 0], sizes = [4, 2], strides = [1, 1]} : vector<4x256xbf16> to vector<4x2xbf16>
    %8 = tpu.concatenate %6, %7 in 1 : vector<4x254xbf16>, vector<4x2xbf16> -> vector<4x256xbf16>
    %9 = vector.extract_strided_slice %2 {offsets = [0, 16], sizes = [4, 240], strides = [1, 1]} : vector<4x256xbf16> to vector<4x240xbf16>
    %10 = vector.extract_strided_slice %2 {offsets = [0, 0], sizes = [4, 16], strides = [1, 1]} : vector<4x256xbf16> to vector<4x16xbf16>
    %11 = tpu.concatenate %9, %10 in 1 : vector<4x240xbf16>, vector<4x16xbf16> -> vector<4x256xbf16>
    %12 = tpu.concatenate %2, %5, %8, %11 in 0 : vector<4x256xbf16>, vector<4x256xbf16>, vector<4x256xbf16>, vector<4x256xbf16> -> vector<16x256xbf16>
    %c0_2 = arith.constant 0 : index
    %c0_3 = arith.constant 0 : index
    %13 = vector.load %arg5[%c0_2, %c0_3] : memref<48x256xbf16, #tpu.memory_space<vmem>>, vector<16x256xbf16>
    tpu.vector_store %arg5[%c0_2, %c0_3], %12 {strides = array<i32>} : memref<48x256xbf16, #tpu.memory_space<vmem>>, vector<16x256xbf16>,
    %14 = vector.extract_strided_slice %2 {offsets = [0, 17], sizes = [4, 239], strides = [1, 1]} : vector<4x256xbf16> to vector<4x239xbf16>
    %15 = vector.extract_strided_slice %2 {offsets = [0, 0], sizes = [4, 17], strides = [1, 1]} : vector<4x256xbf16> to vector<4x17xbf16>
    %16 = tpu.concatenate %14, %15 in 1 : vector<4x239xbf16>, vector<4x17xbf16> -> vector<4x256xbf16>
    %17 = vector.extract_strided_slice %2 {offsets = [0, 18], sizes = [4, 238], strides = [1, 1]} : vector<4x256xbf16> to vector<4x238xbf16>
    %18 = vector.extract_strided_slice %2 {offsets = [0, 0], sizes = [4, 18], strides = [1, 1]} : vector<4x256xbf16> to vector<4x18xbf16>
    %19 = tpu.concatenate %17, %18 in 1 : vector<4x238xbf16>, vector<4x18xbf16> -> vector<4x256xbf16>
    %20 = vector.extract_strided_slice %2 {offsets = [0, 32], sizes = [4, 224], strides = [1, 1]} : vector<4x256xbf16> to vector<4x224xbf16>
    %21 = vector.extract_strided_slice %2 {offsets = [0, 0], sizes = [4, 32], strides = [1, 1]} : vector<4x256xbf16> to vector<4x32xbf16>
    %22 = tpu.concatenate %20, %21 in 1 : vector<4x224xbf16>, vector<4x32xbf16> -> vector<4x256xbf16>
    %23 = vector.extract_strided_slice %2 {offsets = [0, 33], sizes = [4, 223], strides = [1, 1]} : vector<4x256xbf16> to vector<4x223xbf16>
    %24 = vector.extract_strided_slice %2 {offsets = [0, 0], sizes = [4, 33], strides = [1, 1]} : vector<4x256xbf16> to vector<4x33xbf16>
    %25 = tpu.concatenate %23, %24 in 1 : vector<4x223xbf16>, vector<4x33xbf16> -> vector<4x256xbf16>
    %26 = tpu.concatenate %16, %19, %22, %25 in 0 : vector<4x256xbf16>, vector<4x256xbf16>, vector<4x256xbf16>, vector<4x256xbf16> -> vector<16x256xbf16>
    %c16 = arith.constant 16 : index
    %c0_4 = arith.constant 0 : index
    %27 = vector.load %arg5[%c16, %c0_4] : memref<48x256xbf16, #tpu.memory_space<vmem>>, vector<16x256xbf16>
    tpu.vector_store %arg5[%c16, %c0_4], %26 {strides = array<i32>} : memref<48x256xbf16, #tpu.memory_space<vmem>>, vector<16x256xbf16>,
    %28 = vector.extract_strided_slice %2 {offsets = [0, 34], sizes = [4, 222], strides = [1, 1]} : vector<4x256xbf16> to vector<4x222xbf16>
    %29 = vector.extract_strided_slice %2 {offsets = [0, 0], sizes = [4, 34], strides = [1, 1]} : vector<4x256xbf16> to vector<4x34xbf16>
    %30 = tpu.concatenate %28, %29 in 1 : vector<4x222xbf16>, vector<4x34xbf16> -> vector<4x256xbf16>
    %31 = tpu.concatenate %30, %30, %30, %30 in 0 : vector<4x256xbf16>, vector<4x256xbf16>, vector<4x256xbf16>, vector<4x256xbf16> -> vector<16x256xbf16>
    %c32 = arith.constant 32 : index
    %c0_5 = arith.constant 0 : index
    %32 = vector.load %arg5[%c32, %c0_5] : memref<48x256xbf16, #tpu.memory_space<vmem>>, vector<16x256xbf16>
    tpu.vector_store %arg5[%c32, %c0_5], %31 {strides = array<i32>} : memref<48x256xbf16, #tpu.memory_space<vmem>>, vector<16x256xbf16>,
    %c0_6 = arith.constant 0 : index
    %c0_7 = arith.constant 0 : index
    %33 = vector.load %arg2[%c0_6, %c0_7] : memref<8x48xbf16, #tpu.memory_space<vmem>>, vector<8x48xbf16>
    %c0_8 = arith.constant 0 : index
    %c0_9 = arith.constant 0 : index
    %34 = vector.load %arg5[%c0_8, %c0_9] : memref<48x256xbf16, #tpu.memory_space<vmem>>, vector<48x256xbf16>
    %cst = arith.constant dense<0.000000e+00> : vector<8x256xf32>
    %35 = tpu.matmul %33, %34, %cst {dimension_numbers = #tpu.dot_dimension_numbers<[1], [0], [0], [1], [0, 0, 1, 1], [], []>} : vector<8x48xbf16>, vector<48x256xbf16>, vector<8x256xf32> -> vector<8x256xf32>
    %c0_10 = arith.constant 0 : index
    %c0_11 = arith.constant 0 : index
    %36 = vector.load %arg3[%c0_10, %c0_11] : memref<8x1xf32, #tpu.memory_space<vmem>>, vector<8x1xf32>
    %37 = vector.broadcast %36 : vector<8x1xf32> to vector<8x256xf32>
    %38 = arith.addf %35, %37 : vector<8x256xf32>
    %c0_12 = arith.constant 0 : index
    %c0_13 = arith.constant 0 : index
    %c0_14 = arith.constant 0 : index
    %39 = vector.load %arg4[%c0_12, %c0_13, %c0_14] : memref<1x8x256xf32, #tpu.memory_space<vmem>>, vector<1x8x256xf32>
    %40 = vector.shape_cast %39 : vector<1x8x256xf32> to vector<8x256xf32>
    %41 = vector.shape_cast %38 : vector<8x256xf32> to vector<1x8x256xf32>
    tpu.vector_store %arg4[%c0_12, %c0_13, %c0_14], %41 {strides = array<i32>} : memref<1x8x256xf32, #tpu.memory_space<vmem>>, vector<1x8x256xf32>,
    return
  }
  func.func @transform_0(%arg0: i32) -> (i32, i32, i32) {
    %c0_i32 = arith.constant 0 : i32
    %c0_i32_0 = arith.constant 0 : i32
    %c0_i32_1 = arith.constant 0 : i32
    return %arg0, %c0_i32, %c0_i32_0 : i32, i32, i32
  }
  func.func @transform_1(%arg0: i32) -> (i32, i32) {
    %c0_i32 = arith.constant 0 : i32
    %c0_i32_0 = arith.constant 0 : i32
    %c0_i32_1 = arith.constant 0 : i32
    return %c0_i32, %c0_i32_0 : i32, i32
  }
  func.func @transform_2(%arg0: i32) -> (i32, i32) {
    %c0_i32 = arith.constant 0 : i32
    %c0_i32_0 = arith.constant 0 : i32
    %c0_i32_1 = arith.constant 0 : i32
    return %c0_i32, %c0_i32_0 : i32, i32
  }
  func.func @transform_3(%arg0: i32) -> (i32, i32, i32) {
    %c0_i32 = arith.constant 0 : i32
    %c0_i32_0 = arith.constant 0 : i32
    %c0_i32_1 = arith.constant 0 : i32
    return %arg0, %c0_i32, %c0_i32_0 : i32, i32, i32
  }
}

</mosaic_0001>

<bundles_post_ra>
// kernel: tpu_custom_call.1
= control target key start
LH: loop header
LB: loop body
LE: loop exit
PB: predicated region body
PF: predicated region fallthrough
CT: control target
= control target key end

     0   :  { %8 = vsyncpa [#allocation4], 0  ;;  %s955_s0 = inlined_call_operand.hbm [shape: f32[2,4,256], index: 0, kind: input, shape index: {}]   ;;  %s956_s1 = inlined_call_operand.vmem [shape: bf16[8,48], index: 1, kind: input, shape index: {}]   ;;  %s957_s2 = inlined_call_operand.vmem [shape: f32[8,1], index: 2, kind: input, shape index: {}]   ;;  %s958_s3 = inlined_call_operand.hbm [shape: f32[2,8,256], index: 3, kind: output, shape index: {}]  }
   0x1   :  { %10 = vsyncpa [#allocation4 + $0x1], 0 }
   0x2   :  { %11 = vsyncpa [#allocation5], 0 }
   0x3   :  { %13 = vsyncpa [#allocation5 + $0x1], 0  ;;  %s781_s12 = smov 0   ;;  %s783_s13 = smov 0  }
   0x4   :  { %s785_s14 = smov 0   ;;  %s787_s15 = smov 0  }
   0x5 LB: > { %s802_s16 = sadd.s32 4294967295, %s750_s15   ;;  %s549_s17 = sadd.s32 4294967294, %s750_s15   ;;  %s750_s15 = sphi %s787_s15, %s968_s15   ;;  %s746_s14 = sphi %s785_s14, %s967_s14   ;;  %s742_s13 = sphi %s783_s13, %s966_s13   ;;  %s738_s12 = sphi %s781_s12, %s965_s12  }
   0x6   : > { %s806_s18 = sadd.s32 1, %s750_s15   ;;  %s26_s19 = sadd.s32 1, %s746_s14 }
   0x7   : > { %s23_s20 = ssub.s32 %s750_s15, %s806_s18  ;;  %p33_p0 = scmp.ne.s32.totalorder %s746_s14, %s742_s13 }
   0x8   : > { %p24_p1 = scmp.eq.s32.totalorder %s23_s20, 0  ;;  %p34_p2 = scmp.eq.s32.totalorder %s750_s15, 0 }
   0x9   : > { %p39_p3 = scmp.ne.s32.totalorder %s742_s13, %s738_s12  ;;  %p40_p4 = scmp.eq.s32.totalorder %s802_s16, 0 }
   0xa   : > { %s818_s21 = scalar_select %p24_p1, %s746_s14, %s26_s19  }
   0xb   : > { %p820_p5 = por %p34_p2, %p33_p0  ;;  %p824_p6 = por %p40_p4, %p39_p3 }
   0xc   : > { %p105_p7 = scmp.eq.s32.totalorder %s802_s16, 1  ;;  %p111_p8 = scmp.eq.s32.totalorder %s549_s17, 1 }
   0xd   : > { %p609_p10 = scmp.lt.s32.totalorder %s750_s15, 2  ;;  %s137_s26 = sand.u32 1, %s746_s14  }
   0xe   : > { %p831_p11 = por %p105_p7, %p33_p0  ;;  %p835_p12 = por %p111_p8, %p39_p3 }
   0xf   : > { %s589_s27 = sshll.u32 %s750_s15, 3  ;;  %s552_s28 = sshll.u32 %s137_s26, 3 }
  0x10   : > { %s146_s4 = scalar_lea.hbm %s955_s0, %s589_s27  ;;  %s141_s6 = scalar_lea.vmem [#allocation3], %s552_s28 }
  0x11   : > { %s148_s5 = sshll.u32 %s146_s4, 4  ;;  %s150_s7 = sshll.u32 %s141_s6, 4  ;;  %s149_s5 = int_to_ptr.hbm [resolvable:$true] %s148_s5  ;;  %s151_s7 = int_to_ptr.vmem [resolvable:$true] %s150_s7 }
  0x12   : > { %p846_p13 = pnand %p609_p10, %p820_p5  ;;  %p555_p0 = scmp.ge.s32.totalorder %s750_s15, 1 }
  0x13   : > { %p155_p1 = scmp.lt.s32.totalorder %s750_s15, 3  ;;  %s138_s9 = scalar_lea.sflag [#allocation4], %s137_s26 }
  0x14   : > { %s654_s10 = sshra.s32 %s149_s5, 4  ;;  %p658_p3 = pneg %p846_p13  ;;  %s655_s10 = int_to_ptr.hbm [resolvable:$true] %s654_s10 }
  0x15   : > { %s656_s11 = scalar_lea.hbm %s655_s10, 8  ;;  %s661_s20 = scalar_lea.hbm %s955_s0, 16 }
  0x16   : > { %p657_p2 = scmp.ne.s32.totalorder %s655_s10, %s656_s11  ;;  %p662_p5 = scmp.lt.s32.totalorder %s655_s10, %s955_s0 }
  0x17   : > { %p663_p8 = scmp.lt.s32.totalorder %s661_s20, %s656_s11 }
  0x18   : > { %p659_p4 = pnand %p658_p3, %p657_p2 }
  0x19   : > { %p664_p10 = por %p663_p8, %p662_p5 }
  0x1a   : > { %p660_p7 = pneg %p659_p4 }
  0x1c   : > { %p665_p9 = pnand %p664_p10, %p660_p7 }
  0x1e   : > { %668 = shalt.err (!%p665_p9)
}
  0x1f   : > { %604 = dma.hbm_to_vmem [thread:$0]  (!%p846_p13), %s149_s5, 128, %s151_s7, %s138_s9  }
  0x20   : > { %p156_p2 = pnand %p555_p0, %p155_p1 }
  0x21   : > { %s867_s26 = sand.u32 (!%p156_p2), 1, %s742_s13  }
  0x22   : > { %159 = sbr.rel (%p156_p2) target bundleno = 366 (0x16e), region = 32  ;;  %s556_s28 = sshll.u32 (!%p156_p2), %s867_s26, 3 }
  0x23   : > { %s162_s29 = scalar_lea.sflag (!%p156_p2), [#allocation4], %s867_s26  ;;  %s165_s30 = scalar_lea.vmem (!%p156_p2), [#allocation3], %s556_s28 }
  0x27   : > { %729 = dma.done.wait (%p824_p6), %s162_s29, 128  }
  0x28   : > { %731 = vsyncadd (%p824_p6), %s162_s29, 4294967168  ;;  %v190_v0 = vld [vmem:[%s165_s30] sm:$0xff]  ;;  %s752_s4 = smov 110   ;;  %s753_s5 = smov 94   ;;  %vm349_vm0 = vcmask 769024   ;;  %vm242_vm1 = vcmask 1041408  }
  0x29   : > { %192 = vst [vmem:[#allocation1] ss:$2 sm:$0xff] %v190_v0  ;;  %s754_s6 = smov 96   ;;  %s755_s23 = smov 111   ;;  %vm249_vm2 = vcmask 1043456   ;;  %vm254_vm3 = vcmask 1045504  }
  0x2a   : > { %s756_s7 = smov 95   ;;  %s757_s8 = smov 127   ;;  %vm285_vm4 = vcmask 900096   ;;  %vm295_vm5 = vcmask 785408   ;;  %vm275_vm6 = vcmask 908288   ;;  %vm305_vm7 = vcmask 777216  }
  0x2b   : > { %s758_s9 = smov 126   ;;  %s759_s10 = smov 112   ;;  %vm207_vm8 = vcmask 1039360   ;;  %vm217_vm9 = vcmask 1031168   ;;  %vm227_vm10 = vcmask 916480   ;;  %vm430_vm11 = vcmask 392192  }
  0x2c   : > { %s596_s22 = sshll.u32 %s802_s16, 4  ;;  %s557_s27 = sshll.u32 %s867_s26, 4 }
  0x2d   : > { %s474_s30 = scalar_lea.hbm %s958_s3, %s596_s22 }
  0x30   : > { %v193_v1 = vld.sshfl [vmem:[#allocation1] sm:$0xff pattern:$0x75316420]  ;;  %v194_v2 = vld.sshfl [vmem:[#allocation1 + $0x8] sm:$0xff pattern:$0x75316420] }
  0x31   : > { %v197_v3 = vpack.c.bf16 %v194_v2, %v193_v1 }
  0x33   : > { %v199_v4 = vunpack.c.l.b16 %v197_v3  ;;  %v200_v6 = vunpack.c.h.b16 %v197_v3 }
  0x35   : > { %v875_v5 = vpack.c.b16 %v199_v4, %v199_v4  ;;  %v880_v7 = vpack.c.b16 %v200_v6, %v200_v6 }
  0x37   : > { %281 = vrot.lane.b32.xlu1 %v875_v5, %s752_s4  ;;  %345 = vrot.lane.b32.xlu0 %v875_v5, %s753_s5 }
  0x38   : > { %291 = vrot.lane.b32.xlu2 %v875_v5, %s754_s6 }
  0x3f   : > { %283 = vrot.lane.b32.xlu1 %v880_v7, %s752_s4  ;;  %347 = vrot.lane.b32.xlu0 %v880_v7, %s753_s5  ;;  %s188_s4 = scalar_lea.vmem [#allocation6], %s557_s27 }
  0x40   : > { %293 = vrot.lane.b32.xlu2 %v880_v7, %s754_s6  ;;  %s476_s5 = sshll.u32 %s188_s4, 4  ;;  %s478_s6 = sshll.u32 %s474_s30, 4  ;;  %s477_s5 = int_to_ptr.vmem [resolvable:$true] %s476_s5  ;;  %s479_s6 = int_to_ptr.hbm [resolvable:$true] %s478_s6 }
  0x41   : > { %s698_s16 = sshra.s32 %s479_s6, 4  ;;  %s699_s16 = int_to_ptr.hbm [resolvable:$true] %s698_s16 }
  0x42   : > { %p705_p0 = scmp.lt.s32.totalorder %s699_s16, %s958_s3 }
  0x47   : > { %273 = vrot.lane.b32.xlu1 %v880_v7, %s755_s23  ;;  %271 = vrot.lane.b32.xlu0 %v875_v5, %s755_s23  ;;  %s463_s23 = scalar_lea.sflag [#allocation5], %s867_s26 }
  0x48   : > { %301 = vrot.lane.b32.xlu2 %v875_v5, %s756_s7 }
  0x4f   : > { %203 = vrot.lane.b32.xlu1 %v875_v5, %s757_s8  ;;  %303 = vrot.lane.b32.xlu0 %v880_v7, %s756_s7  ;;  %s700_s7 = scalar_lea.hbm %s699_s16, 16 }
  0x50   : > { %205 = vrot.lane.b32.xlu2 %v880_v7, %s757_s8  ;;  %p701_p6 = scmp.ne.s32.totalorder %s699_s16, %s700_s7 }
  0x52   : > { %p702_p9 = pnand %p701_p6, %p831_p11 }
  0x54   : > { %p703_p13 = pneg %p702_p9 }
  0x57   : > { %215 = vrot.lane.b32.xlu1 %v880_v7, %s758_s9  ;;  %213 = vrot.lane.b32.xlu0 %v875_v5, %s758_s9 }
  0x58   : > { %223 = vrot.lane.b32.xlu2 %v875_v5, %s759_s10 }
  0x5f   : > { %225 = vrot.lane.b32.xlu0 %v880_v7, %s759_s10  ;;  %s704_s10 = scalar_lea.hbm %s958_s3, 32 }
  0x60   : > { %p706_p1 = scmp.lt.s32.totalorder %s704_s10, %s700_s7 }
  0x62   : > { %p707_p3 = por %p706_p1, %p705_p0 }
  0x64   : > { %p708_p4 = pnand %p707_p3, %p703_p13 }
  0x92   : > { %v292_v8 = vpop.permute.xlu2 %291 }
  0x9a   : > { %v294_v15 = vpop.permute.xlu2 %293 }
  0x9b   : > { %v296_v39 = vsel %vm295_vm5, %v292_v8, %v294_v15  ;;  %v300_v42 = vsel %vm295_vm5, %v294_v15, %v292_v8 }
  0x9c   : > { %v315_v49 = vrot.slane %v296_v39, 4  ;;  %v316_v50 = vrot.slane %v300_v42, 4 }
  0xa2   : > { %v302_v36 = vpop.permute.xlu2 %301 }
  0xa9   : > { %v282_v9 = vpop.permute.xlu1 %281  ;;  %v346_v10 = vpop.permute.xlu0 %345 }
  0xaa   : > { %v206_v1 = vpop.permute.xlu2 %205 }
  0xb1   : > { %v284_v11 = vpop.permute.xlu1 %283  ;;  %v348_v12 = vpop.permute.xlu0 %347 }
  0xb2   : > { %v350_v13 = vsel %vm349_vm0, %v346_v10, %v348_v12  ;;  %v354_v14 = vsel %vm349_vm0, %v348_v12, %v346_v10  ;;  %v286_v37 = vsel %vm285_vm4, %v282_v9, %v284_v11  ;;  %v290_v38 = vsel %vm285_vm4, %v284_v11, %v282_v9  ;;  %v394_v10 = vld [vmem:[%s957_s2] sm:$0xff] }
  0xb3   : > { %v356_v16 = vrot.slane %v350_v13, 6  ;;  %v357_v17 = vrot.slane %v354_v14, 6  ;;  %v358_v18 = vrot.slane %v350_v13, 4  ;;  %v359_v19 = vrot.slane %v354_v14, 4 }
  0xb4   : > { %v360_v20 = vrot.slane %v350_v13, 2  ;;  %v361_v21 = vrot.slane %v354_v14, 2  ;;  %v312_v43 = vrot.slane %v286_v37, 6  ;;  %v313_v44 = vrot.slane %v290_v38, 6 }
  0xb5   : > { %v364_v22 = vsel %vm242_vm1, %v350_v13, %v356_v16  ;;  %v366_v23 = vsel %vm242_vm1, %v354_v14, %v357_v17  ;;  %v760_v12 = vmov 0  }
  0xb6   : > { %v368_v24 = vsel %vm249_vm2, %v364_v22, %v358_v18  ;;  %v370_v25 = vsel %vm249_vm2, %v366_v23, %v359_v19  ;;  %652 = vset.pattern.permute.xlu1 %v760_v12  ;;  %653 = vset.pattern.permute.xlu0 %v760_v12 }
  0xb7   : > { %v372_v26 = vsel %vm254_vm3, %v368_v24, %v360_v20  ;;  %v374_v27 = vsel %vm254_vm3, %v370_v25, %v361_v21  ;;  %397 = vperm.xlu1 %652, %v394_v10   ;;  %v224_v20 = vpop.permute.xlu2 %223 }
  0xb8   : > { %v377_v28 = vunpack.c.l.b16 %v372_v26  ;;  %v378_v29 = vunpack.c.l.b16 %v374_v27  ;;  %v379_v30 = vunpack.c.h.b16 %v372_v26  ;;  %v380_v31 = vunpack.c.h.b16 %v374_v27 }
  0xb9   : > { %v274_v32 = vpop.permute.xlu1 %273  ;;  %v272_v33 = vpop.permute.xlu0 %271 }
  0xba   : > { %v381_v34 = vpack.c.b16 %v378_v29, %v377_v28  ;;  %v382_v35 = vpack.c.b16 %v380_v31, %v379_v30  ;;  %v276_v40 = vsel %vm275_vm6, %v272_v33, %v274_v32  ;;  %v280_v41 = vsel %vm275_vm6, %v274_v32, %v272_v33 }
  0xbb   : > { %v322_v45 = vsel %vm242_vm1, %v276_v40, %v312_v43  ;;  %v324_v46 = vsel %vm242_vm1, %v280_v41, %v313_v44 }
  0xbc   : > { %385 = vst [vmem:[#allocation2 + $0x20] sm:$0xff] %v381_v34  ;;  %v326_v57 = vsel %vm249_vm2, %v322_v45, %v315_v49  ;;  %v328_v58 = vsel %vm249_vm2, %v324_v46, %v316_v50  ;;  %v387_v50 = vld [vmem:[%s956_s1] sm:$0xf] }
  0xbd   : > { %386 = vst [vmem:[#allocation2 + $0x28] sm:$0xff] %v382_v35 }
  0xc1   : > { %v204_v47 = vpop.permute.xlu1 %203  ;;  %v304_v48 = vpop.permute.xlu0 %303 }
  0xc2   : > { %v306_v51 = vsel %vm305_vm7, %v302_v36, %v304_v48  ;;  %v310_v52 = vsel %vm305_vm7, %v304_v48, %v302_v36  ;;  %v208_v13 = vsel %vm207_vm8, %v204_v47, %v206_v1  ;;  %v212_v14 = vsel %vm207_vm8, %v206_v1, %v204_v47 }
  0xc3   : > { %v318_v53 = vrot.slane %v306_v51, 2  ;;  %v319_v54 = vrot.slane %v310_v52, 2  ;;  %v576_v55 = vld [vmem:[#allocation2 + $0x20] sm:$0xf]  ;;  %v594_v56 = vld [vmem:[#allocation2 + $0x24] sm:$0xf] }
  0xc4   : > { %v595_v59 = vld [vmem:[#allocation2 + $0x24] sm:$0xf0]  ;;  %v578_v60 = vld [vmem:[#allocation2 + $0x28] sm:$0xf0]  ;;  %v234_v16 = vrot.slane %v208_v13, 6  ;;  %v235_v17 = vrot.slane %v212_v14, 6 }
  0xc5   : > { %v330_v61 = vsel %vm254_vm3, %v326_v57, %v318_v53  ;;  %v332_v62 = vsel %vm254_vm3, %v328_v58, %v319_v54  ;;  %v577_v63 = vor.u32 %v595_v59, %v576_v55  ;;  %v581_v0 = vor.u32 %v594_v56, %v578_v60 }
  0xc6   : > { %v335_v2 = vunpack.c.l.b16 %v330_v61  ;;  %v336_v3 = vunpack.c.l.b16 %v332_v62  ;;  %v337_v4 = vunpack.c.h.b16 %v330_v61  ;;  %v338_v6 = vunpack.c.h.b16 %v332_v62 }
  0xc7   : > { %439 = vmatpush.bf16.msra.mxu0 %v577_v63  ;;  %452 = vmatpush.bf16.msra.mxu1 %v581_v0  ;;  %v245_v23 = vsel %vm242_vm1, %v875_v5, %v234_v16  ;;  %v248_v24 = vsel %vm242_vm1, %v880_v7, %v235_v17 }
  0xc8   : > { %v339_v8 = vpack.c.b16 %v336_v3, %v335_v2  ;;  %v340_v9 = vpack.c.b16 %v338_v6, %v337_v4 }
  0xc9   : > { %v214_v11 = vpop.permute.xlu0 %213  ;;  %v216_v15 = vpop.permute.xlu1 %215 }
  0xca   : > { %343 = vst [vmem:[#allocation2 + $0x10] sm:$0xff] %v339_v8  ;;  %v218_v18 = vsel %vm217_vm9, %v214_v11, %v216_v15  ;;  %v222_v19 = vsel %vm217_vm9, %v216_v15, %v214_v11 }
  0xcb   : > { %344 = vst [vmem:[#allocation2 + $0x18] sm:$0xff] %v340_v9  ;;  %v237_v21 = vrot.slane %v218_v18, 4  ;;  %v238_v22 = vrot.slane %v222_v19, 4 }
  0xcd   : > { %v251_v36 = vsel %vm249_vm2, %v245_v23, %v237_v21  ;;  %v253_v37 = vsel %vm249_vm2, %v248_v24, %v238_v22 }
  0xd1   : > { %v226_v25 = vpop.permute.xlu0 %225  ;;  %v568_v26 = vld [vmem:[#allocation2 + $0x10] sm:$0xf]  ;;  %v592_v27 = vld [vmem:[#allocation2 + $0x14] sm:$0xf] }
  0xd2   : > { %v228_v28 = vsel %vm227_vm10, %v224_v20, %v226_v25  ;;  %v232_v29 = vsel %vm227_vm10, %v226_v25, %v224_v20  ;;  %v593_v30 = vld [vmem:[#allocation2 + $0x14] sm:$0xf0]  ;;  %v570_v31 = vld [vmem:[#allocation2 + $0x18] sm:$0xf0] }
  0xd3   : > { %v240_v32 = vrot.slane %v228_v28, 2  ;;  %v241_v33 = vrot.slane %v232_v29, 2  ;;  %v569_v34 = vor.u32 %v593_v30, %v568_v26  ;;  %v573_v35 = vor.u32 %v592_v27, %v570_v31 }
  0xd5   : > { %v256_v5 = vsel %vm254_vm3, %v251_v36, %v240_v32  ;;  %v258_v38 = vsel %vm254_vm3, %v253_v37, %v241_v33  ;;  %440 = vmatpush.bf16.msra.mxu0 %v569_v34  ;;  %453 = vmatpush.bf16.msra.mxu1 %v573_v35 }
  0xd6   : > { %v261_v7 = vunpack.c.l.b16 %v256_v5  ;;  %v262_v39 = vunpack.c.l.b16 %v258_v38  ;;  %v263_v40 = vunpack.c.h.b16 %v256_v5  ;;  %v264_v41 = vunpack.c.h.b16 %v258_v38 }
  0xd8   : > { %v265_v42 = vpack.c.b16 %v262_v39, %v261_v7  ;;  %v266_v43 = vpack.c.b16 %v264_v41, %v263_v40 }
  0xda   : > { %269 = vst [vmem:[#allocation2] sm:$0xff] %v265_v42 }
  0xdb   : > { %270 = vst [vmem:[#allocation2 + $0x8] sm:$0xff] %v266_v43 }
  0xe1   : > { %v560_v44 = vld [vmem:[#allocation2] sm:$0xf]  ;;  %v590_v45 = vld [vmem:[#allocation2 + $0x4] sm:$0xf] }
  0xe2   : > { %v591_v46 = vld [vmem:[#allocation2 + $0x4] sm:$0xf0]  ;;  %v562_v47 = vld [vmem:[#allocation2 + $0x8] sm:$0xf0] }
  0xe3   : > { %v561_v48 = vor.u32 %v591_v46, %v560_v44  ;;  %v565_v49 = vor.u32 %v590_v45, %v562_v47 }
  0xe5   : > { %441 = vmatpush.bf16.msra.mxu0 %v561_v48  ;;  %454 = vmatpush.bf16.msra.mxu1 %v565_v49 }
  0xe8   : > { %582 = vmatmul.msk.bf16.vlgmr.msra.gmra.mxu0 %vm430_vm11, %v387_v50  ;;  %583 = vmatmul.msk.bf16.vlgmr.msra.gmra.mxu1 %vm430_vm11, %v387_v50 }
 0x129   : > { %v398_v51 = vpop.permute.xlu1 %397 }
 0x165   : > { %v443_v52 = vpop.f32.mrf.mxu0  ;;  %v456_v53 = vpop.f32.mrf.mxu1 }
 0x166   : > { %v444_v54 = vadd.f32 %v443_v52, %v398_v51  ;;  %v457_v55 = vadd.f32 %v456_v53, %v398_v51 }
 0x168   : > { %460 = vst [vmem:[%s188_s4] sm:$0xff] %v444_v54 }
 0x169   : > { %461 = vst [vmem:[%s188_s4 + $0x8] sm:$0xff] %v457_v55 }
 0x16a   : > { %711 = shalt.err (!%p708_p4)
}
 0x16b   : > { %599 = dma.vmem_to_hbm [thread:$0]  (%p831_p11), %s477_s5, 256, %s479_s6, %s463_s23  }
 0x16d   : > { %v445_v56 = vpop.f32.mrf.mxu0  ;;  %v458_v57 = vpop.f32.mrf.mxu1 }
 0x16e PF: > { %s490_s26 = sand.u32 1, %s738_s12   ;;  %p964_p7 = scmp.ge.s32.totalorder %s750_s15, 2 }
 0x16f   : > { %s491_s19 = scalar_lea.sflag [#allocation5], %s490_s26 }
 0x170   : > { %p606_p5 = pnand %p964_p7, %p835_p12 }
 0x172   : > { %p607_p8 = pneg %p606_p5 }
 0x174   : > { %733 = dma.done.wait (%p607_p8), %s491_s19, 256  }
 0x175   : > { %735 = vsyncadd (%p607_p8), %s491_s19, 4294967040  ;;  %p16_p11 = scmp.ge.s32.totalorder %s806_s18, 4   ;;  %s965_s12 = smov %s742_s13 }
 0x176   : > { %s966_s13 = smov %s746_s14  ;;  %s967_s14 = smov %s818_s21 }
 0x177   : > { %s968_s15 = smov %s806_s18  ;;  %18 = sbr.rel (!%p16_p11) target bundleno = 5 (0x5), region = 77 }
 0x17c   :  { %497 = vsyncpa [#allocation4], 1 }
 0x17d   :  { %499 = vsyncpa [#allocation4 + $0x1], 1 }
 0x17e   :  { %500 = vsyncpa [#allocation5], 1 }
 0x17f   :  { %502 = vsyncpa [#allocation5 + $0x1], 1 }

</bundles_post_ra>
